<compile_context>
chip_gen: v6e
topology: v6e:2x2x1
jax: 0.10.0
libtpu: 0.0.40
codegen_flags: <defaults>
</compile_context>

<pallas_src>
import functools

import jax
import jax.numpy as jnp
from jax.experimental import pallas as pl
from jax.experimental.pallas import tpu as pltpu

_MiB = 1024 * 1024


# ----------------------------------------------------------------------------
# VMEM planning (per TPU generation).
# ----------------------------------------------------------------------------
def _vmem_plan():
    phys = None
    try:
        info = pltpu.get_tpu_info()
        phys = getattr(info, "vmem_capacity_bytes", None)
    except Exception:
        phys = None
    if phys is not None and phys >= 96 * _MiB:
        # v5e / v6e: 128 MiB physical VMEM -> big lane tiles, raised scoped limit.
        return {"slice_budget": 6 * _MiB,
                "fused_budget": 12 * _MiB,
                "vmem_limit": 96 * _MiB}
    # v7x (64 MiB per TensorCore) or unknown hardware -> conservative sizing:
    # Pass 2 holds ~5 slices (Buffered(3) in + 2 out), 5 * 3 MiB << 48 MiB.
    return {"slice_budget": 3 * _MiB,
            "fused_budget": 4 * _MiB,
            "vmem_limit": 48 * _MiB}


def _choose_hw_tile(C, HW, itemsize, budget_bytes):
    """Largest multiple-of-128 lane tile with a (C, T) slice under budget."""
    if C * HW * itemsize <= budget_bytes:
        return HW                      # full extent: always layout-legal
    max_t = (budget_bytes // (C * itemsize)) // 128 * 128
    return max(max_t, 128)


def _buffered_spec(shape, index_map, depth, total_steps):
    """BlockSpec with deeper input pipelining when the grid is long enough."""
    if total_steps >= depth:
        return pl.BlockSpec(shape, index_map, pipeline_mode=pl.Buffered(depth))
    return pl.BlockSpec(shape, index_map)


# ----------------------------------------------------------------------------
# Shared MLP on the pooled (C, 2) = [avg | max] vector -> (C, 1) sigmoid gate.
# ----------------------------------------------------------------------------
def _mlp_gate(pooled, w1_ref, b1_ref, w2_ref, b2_ref):
    h = jnp.dot(w1_ref[...], pooled,
                preferred_element_type=jnp.float32) + b1_ref[...]      # (Cr, 2)
    h = h * jax.nn.sigmoid(h)                                          # SiLU
    o = jnp.dot(w2_ref[...], h,
                preferred_element_type=jnp.float32) + b2_ref[...]      # (C, 2)
    return jax.nn.sigmoid(o[:, 0:1] + o[:, 1:2])                       # (C, 1)


# ----------------------------------------------------------------------------
# Fused single-pass kernel: one batch slab resident in VMEM.
# ----------------------------------------------------------------------------
def _fused_kernel(x_ref, w1_ref, b1_ref, w2_ref, b2_ref, o_ref, *, hw):
    x = x_ref[0]                                          # (C, HW) native dtype
    xf = x.astype(jnp.float32)
    avg_v = jnp.sum(xf, axis=-1, keepdims=True) * (1.0 / hw)           # (C, 1)
    max_v = jnp.max(xf, axis=-1, keepdims=True)                        # (C, 1)
    pooled = jnp.concatenate([avg_v, max_v], axis=-1)                  # (C, 2)
    gate = _mlp_gate(pooled, w1_ref, b1_ref, w2_ref, b2_ref)           # (C, 1)
    o_ref[0] = (x * gate.astype(x.dtype)).astype(o_ref.dtype)


# ----------------------------------------------------------------------------
# Pass 1: streamed pooled avg/max over HW + shared MLP -> (B, C, 1) gate.
# ----------------------------------------------------------------------------
def _pool_mlp_kernel(x_ref, w1_ref, b1_ref, w2_ref, b2_ref, gate_ref,
                     sum_s, max_s, *, hw, tile):
    # x_ref block: (1, C, T); scratch: sum_s/max_s are tiny (C, 1) partials.
    t = pl.program_id(1)
    n_t = pl.num_programs(1)

    x = x_ref[0].astype(jnp.float32)                      # (C, T)

    @pl.when(t == 0)
    def _():
        sum_s[...] = jnp.zeros_like(sum_s)
        max_s[...] = jnp.full_like(max_s, -jnp.inf)

    def _fold(xs, xm):
        # Per-tile cross-lane reduce (XLU) folded into (C, 1) scratch (VPU).
        sum_s[...] = sum_s[...] + jnp.sum(xs, axis=-1, keepdims=True)
        max_s[...] = jnp.maximum(max_s[...], jnp.max(xm, axis=-1, keepdims=True))

    if hw % tile != 0:
        # Padding mask is only needed (and only applied) on the final tile.
        @pl.when(t < n_t - 1)
        def _():
            _fold(x, x)

        @pl.when(t == n_t - 1)
        def _():
            lane = jax.lax.broadcasted_iota(jnp.int32, x.shape, 1)
            valid = (t * tile + lane) < hw
            _fold(jnp.where(valid, x, 0.0), jnp.where(valid, x, -jnp.inf))
    else:
        _fold(x, x)

    @pl.when(t == n_t - 1)
    def _():
        avg_v = sum_s[...] * (1.0 / hw)                                # (C, 1)
        pooled = jnp.concatenate([avg_v, max_s[...]], axis=-1)         # (C, 2)
        gate = _mlp_gate(pooled, w1_ref, b1_ref, w2_ref, b2_ref)       # (C, 1)
        gate_ref[0] = gate.astype(gate_ref.dtype)


# ----------------------------------------------------------------------------
# Pass 2: lane-dense elementwise scale.
# ----------------------------------------------------------------------------
def _scale_kernel(x_ref, gate_ref, o_ref):
    x = x_ref[0]                                   # (C, T), native dtype
    g = gate_ref[0].astype(x.dtype)                # (C, 1) -> broadcasts lanes
    o_ref[0] = (x * g).astype(o_ref.dtype)


# ----------------------------------------------------------------------------
# Wrapper.
# ----------------------------------------------------------------------------
def channel_attention(x, w1, b1, w2, b2, *, hw_tile=None, in_place=False):
    """x: (B, C, H, W); PyTorch Linear conventions:
       w1: (C//r, C), b1: (C//r,), w2: (C, C//r), b2: (C,).

       in_place=True aliases x's buffer to the output (buffer donation);
       default is False so callers may safely reuse x afterwards."""
    B, C, H, W = x.shape
    HW = H * W
    Cr = w1.shape[0]

    plan = _vmem_plan()
    vmem_limit = plan["vmem_limit"]

    x2 = x.reshape(B, C, HW)
    w1f = w1.astype(jnp.float32)
    w2f = w2.astype(jnp.float32)
    b1c = b1.reshape(Cr, 1).astype(jnp.float32)
    b2c = b2.reshape(C, 1).astype(jnp.float32)

    alias = {0: 0} if in_place else {}

    # -------- Fused single-pass fast path (slab resident in VMEM) --------
    if hw_tile is None and C * HW * 4 <= plan["fused_budget"]:
        out = pl.pallas_call(
            functools.partial(_fused_kernel, hw=HW),
            out_shape=jax.ShapeDtypeStruct((B, C, HW), x.dtype),
            grid_spec=pltpu.PrefetchScalarGridSpec(
                num_scalar_prefetch=0,
                grid=(B,),
                in_specs=[
                    pl.BlockSpec((1, C, HW), lambda b: (b, 0, 0)),
                    pl.BlockSpec((Cr, C), lambda b: (0, 0)),
                    pl.BlockSpec((Cr, 1), lambda b: (0, 0)),
                    pl.BlockSpec((C, Cr), lambda b: (0, 0)),
                    pl.BlockSpec((C, 1), lambda b: (0, 0)),
                ],
                out_specs=pl.BlockSpec((1, C, HW), lambda b: (b, 0, 0)),
            ),
            input_output_aliases=alias,
            compiler_params=pltpu.CompilerParams(
                dimension_semantics=("parallel",),
                vmem_limit_bytes=vmem_limit),
        )(x2, w1f, b1c, w2f, b2c)
        return out.reshape(B, C, H, W)

    # -------- Two-pass streaming path --------
    if hw_tile is not None:
        # Validate: full extent or a multiple of 128 (layout constraint).
        T = min(int(hw_tile), HW)
        if T < HW:
            T = max(128, (T // 128) * 128)
    else:
        T = _choose_hw_tile(C, HW, x.dtype.itemsize, plan["slice_budget"])
    n_t = pl.cdiv(HW, T)
    steps = B * n_t

    # TODO(synk): on v7x with B == 1 both grid axes of Pass 1 map to one core;
    # a 2-way HW core-split with a tiny combine step would recover the idle TC.

    # -------- Pass 1: (B, C, 1) gate --------
    gate = pl.pallas_call(
        functools.partial(_pool_mlp_kernel, hw=HW, tile=T),
        out_shape=jax.ShapeDtypeStruct((B, C, 1), jnp.float32),
        grid_spec=pltpu.PrefetchScalarGridSpec(
            num_scalar_prefetch=0,
            grid=(B, n_t),
            in_specs=[
                _buffered_spec((1, C, T), lambda b, t: (b, 0, t), 3, steps),
                pl.BlockSpec((Cr, C), lambda b, t: (0, 0)),
                pl.BlockSpec((Cr, 1), lambda b, t: (0, 0)),
                pl.BlockSpec((C, Cr), lambda b, t: (0, 0)),
                pl.BlockSpec((C, 1), lambda b, t: (0, 0)),
            ],
            out_specs=pl.BlockSpec((1, C, 1), lambda b, t: (b, 0, 0)),
            scratch_shapes=[pltpu.VMEM((C, 1), jnp.float32),   # running sum
                            pltpu.VMEM((C, 1), jnp.float32)],  # running max
        ),
        compiler_params=pltpu.CompilerParams(
            dimension_semantics=("parallel", "arbitrary"),
            vmem_limit_bytes=vmem_limit),
    )(x2, w1f, b1c, w2f, b2c)

    # -------- Pass 2: x * gate --------
    out = pl.pallas_call(
        _scale_kernel,
        out_shape=jax.ShapeDtypeStruct((B, C, HW), x.dtype),
        grid_spec=pltpu.PrefetchScalarGridSpec(
            num_scalar_prefetch=0,
            grid=(B, n_t),
            in_specs=[
                _buffered_spec((1, C, T), lambda b, t: (b, 0, t), 3, steps),
                pl.BlockSpec((1, C, 1), lambda b, t: (b, 0, 0)),
            ],
            out_specs=pl.BlockSpec((1, C, T), lambda b, t: (b, 0, t)),
        ),
        input_output_aliases=alias,
        compiler_params=pltpu.CompilerParams(
            dimension_semantics=("parallel", "parallel"),
            vmem_limit_bytes=vmem_limit),
    )(x2, gate)

    return out.reshape(B, C, H, W)


def _reference(x, w1, b1, w2, b2):
    # Pure-JAX reference mirroring the PyTorch forward (SiLU hidden layer).
    avg = jnp.mean(x, axis=(2, 3))          # (B, C)
    mx = jnp.max(x, axis=(2, 3))            # (B, C)

    def mlp(v):
        h = v @ w1.T + b1
        h = h * jax.nn.sigmoid(h)           # SiLU
        return h @ w2.T + b2

    gate = jax.nn.sigmoid(mlp(avg) + mlp(mx))             # (B, C)
    return x * gate[:, :, None, None]


if __name__ == "__main__":
    key = jax.random.PRNGKey(0)
    kx, kw1, kb1, kw2, kb2 = jax.random.split(key, 5)

    B, C, H, W = 2, 32, 16, 16
    reduction_ratio = 4
    Cr = C // reduction_ratio

    x = jax.random.normal(kx, (B, C, H, W), dtype=jnp.float32)
    # PyTorch Linear shapes: (out, in).
    w1 = jax.random.normal(kw1, (Cr, C), dtype=jnp.float32) * 0.1
    b1 = jax.random.normal(kb1, (Cr,), dtype=jnp.float32) * 0.1
    w2 = jax.random.normal(kw2, (C, Cr), dtype=jnp.float32) * 0.1
    b2 = jax.random.normal(kb2, (C,), dtype=jnp.float32) * 0.1

    ref = _reference(x, w1, b1, w2, b2)

    # 1) Fused single-pass fast path (slab fits VMEM at this size).
    out = jax.block_until_ready(channel_attention(x, w1, b1, w2, b2))
    assert out.shape == (B, C, H, W)
    assert jnp.allclose(out, ref, atol=1e-5, rtol=1e-5), "mismatch (fused)"

    # 2) Forced HW tiling: two-pass path, grid=(B, 2), (C,1) scratch reduce.
    out_t = jax.block_until_ready(channel_attention(x, w1, b1, w2, b2, hw_tile=128))
    assert jnp.allclose(out_t, ref, atol=1e-5, rtol=1e-5), "mismatch (tiled)"

    # 3) Padded last tile: HW=400 with tile=128 -> 4 tiles, only last masked.
    xp = jax.random.normal(kx, (B, C, 20, 20), dtype=jnp.float32)
    refp = _reference(xp, w1, b1, w2, b2)
    outp = jax.block_until_ready(channel_attention(xp, w1, b1, w2, b2, hw_tile=128))
    assert jnp.allclose(outp, refp, atol=1e-5, rtol=1e-5), "mismatch (padded tile)"

    # 4) Opt-in in-place aliasing path still matches.
    out_ip = jax.block_until_ready(
        channel_attention(x, w1, b1, w2, b2, hw_tile=128, in_place=True))
    assert jnp.allclose(out_ip, ref, atol=1e-5, rtol=1e-5), "mismatch (in-place)"

    print("KERNEL_OK")
</pallas_src>

<mosaic_0001>
module attributes {stable_mosaic.version = 11 : i64} {
  func.func @_fused_kernel(%arg0: i32, %arg1: memref<1x32x256xf32, #tpu.memory_space<vmem>>, %arg2: memref<8x32xf32, #tpu.memory_space<vmem>>, %arg3: memref<8x1xf32, #tpu.memory_space<vmem>>, %arg4: memref<32x8xf32, #tpu.memory_space<vmem>>, %arg5: memref<32x1xf32, #tpu.memory_space<vmem>>, %arg6: memref<1x32x256xf32, #tpu.memory_space<vmem>>) attributes {dimension_semantics = [#tpu.dimension_semantics<parallel>], iteration_bounds = array<i64: 2>, scalar_prefetch = 0 : i64, scratch_operands = 0 : i64, tpu.core_type = #tpu.core_type<tc>, window_params = [{transform_indices = @transform_0, window_bounds = array<i64: 1, 32, 256>}, {pipeline_mode = #tpu.pipeline_mode<synchronous>, transform_indices = @transform_1, window_bounds = array<i64: 8, 32>}, {pipeline_mode = #tpu.pipeline_mode<synchronous>, transform_indices = @transform_2, window_bounds = array<i64: 8, 1>}, {pipeline_mode = #tpu.pipeline_mode<synchronous>, transform_indices = @transform_3, window_bounds = array<i64: 32, 8>}, {pipeline_mode = #tpu.pipeline_mode<synchronous>, transform_indices = @transform_4, window_bounds = array<i64: 32, 1>}, {transform_indices = @transform_5, window_bounds = array<i64: 1, 32, 256>}]} {
    %c0 = arith.constant 0 : index
    %c0_0 = arith.constant 0 : index
    %c0_1 = arith.constant 0 : index
    %0 = vector.load %arg1[%c0, %c0_0, %c0_1] : memref<1x32x256xf32, #tpu.memory_space<vmem>>, vector<1x32x256xf32>
    %1 = vector.shape_cast %0 : vector<1x32x256xf32> to vector<32x256xf32>
    %cst = arith.constant dense<0.000000e+00> : vector<32xf32>
    %2 = vector.multi_reduction <add>, %1, %cst [1] : vector<32x256xf32> to vector<32xf32>
    %3 = vector.shape_cast %2 : vector<32xf32> to vector<32x1xf32>
    %cst_2 = arith.constant 3.906250e-03 : f32
    %4 = vector.broadcast %cst_2 : f32 to vector<32x1xf32>
    %5 = arith.mulf %3, %4 : vector<32x1xf32>
    %cst_3 = arith.constant dense<0xFF800000> : vector<32xf32>
    %6 = vector.multi_reduction <maximumf>, %1, %cst_3 [1] : vector<32x256xf32> to vector<32xf32>
    %7 = vector.shape_cast %6 : vector<32xf32> to vector<32x1xf32>
    %8 = tpu.concatenate %5, %7 in 1 : vector<32x1xf32>, vector<32x1xf32> -> vector<32x2xf32>
    %c0_4 = arith.constant 0 : index
    %c0_5 = arith.constant 0 : index
    %9 = vector.load %arg2[%c0_4, %c0_5] : memref<8x32xf32, #tpu.memory_space<vmem>>, vector<8x32xf32>
    %cst_6 = arith.constant dense<0.000000e+00> : vector<8x2xf32>
    %10 = tpu.matmul %9, %8, %cst_6 {dimension_numbers = #tpu.dot_dimension_numbers<[1], [0], [0], [1], [0, 0, 1, 1], [], []>} : vector<8x32xf32>, vector<32x2xf32>, vector<8x2xf32> -> vector<8x2xf32>
    %c0_7 = arith.constant 0 : index
    %c0_8 = arith.constant 0 : index
    %11 = vector.load %arg3[%c0_7, %c0_8] : memref<8x1xf32, #tpu.memory_space<vmem>>, vector<8x1xf32>
    %12 = vector.broadcast %11 : vector<8x1xf32> to vector<8x2xf32>
    %13 = arith.addf %10, %12 : vector<8x2xf32>
    %14 = arith.negf %13 : vector<8x2xf32>
    %15 = math.exp %14 : vector<8x2xf32>
    %cst_9 = arith.constant 1.000000e+00 : f32
    %16 = vector.broadcast %cst_9 : f32 to vector<8x2xf32>
    %17 = arith.addf %16, %15 : vector<8x2xf32>
    %18 = arith.divf %16, %17 : vector<8x2xf32>
    %19 = arith.mulf %13, %18 : vector<8x2xf32>
    %c0_10 = arith.constant 0 : index
    %c0_11 = arith.constant 0 : index
    %20 = vector.load %arg4[%c0_10, %c0_11] : memref<32x8xf32, #tpu.memory_space<vmem>>, vector<32x8xf32>
    %cst_12 = arith.constant dense<0.000000e+00> : vector<32x2xf32>
    %21 = tpu.matmul %20, %19, %cst_12 {dimension_numbers = #tpu.dot_dimension_numbers<[1], [0], [0], [1], [0, 0, 1, 1], [], []>} : vector<32x8xf32>, vector<8x2xf32>, vector<32x2xf32> -> vector<32x2xf32>
    %c0_13 = arith.constant 0 : index
    %c0_14 = arith.constant 0 : index
    %22 = vector.load %arg5[%c0_13, %c0_14] : memref<32x1xf32, #tpu.memory_space<vmem>>, vector<32x1xf32>
    %23 = vector.broadcast %22 : vector<32x1xf32> to vector<32x2xf32>
    %24 = arith.addf %21, %23 : vector<32x2xf32>
    %25 = vector.extract_strided_slice %24 {offsets = [0, 0], sizes = [32, 1], strides = [1, 1]} : vector<32x2xf32> to vector<32x1xf32>
    %26 = vector.extract_strided_slice %24 {offsets = [0, 1], sizes = [32, 1], strides = [1, 1]} : vector<32x2xf32> to vector<32x1xf32>
    %27 = arith.addf %25, %26 : vector<32x1xf32>
    %28 = arith.negf %27 : vector<32x1xf32>
    %29 = math.exp %28 : vector<32x1xf32>
    %cst_15 = arith.constant 1.000000e+00 : f32
    %30 = vector.broadcast %cst_15 : f32 to vector<32x1xf32>
    %31 = arith.addf %30, %29 : vector<32x1xf32>
    %32 = arith.divf %30, %31 : vector<32x1xf32>
    %33 = vector.broadcast %32 : vector<32x1xf32> to vector<32x256xf32>
    %34 = arith.mulf %1, %33 : vector<32x256xf32>
    %c0_16 = arith.constant 0 : index
    %c0_17 = arith.constant 0 : index
    %c0_18 = arith.constant 0 : index
    %35 = vector.load %arg6[%c0_16, %c0_17, %c0_18] : memref<1x32x256xf32, #tpu.memory_space<vmem>>, vector<1x32x256xf32>
    %36 = vector.shape_cast %35 : vector<1x32x256xf32> to vector<32x256xf32>
    %37 = vector.shape_cast %34 : vector<32x256xf32> to vector<1x32x256xf32>
    tpu.vector_store %arg6[%c0_16, %c0_17, %c0_18], %37 {strides = array<i32>} : memref<1x32x256xf32, #tpu.memory_space<vmem>>, vector<1x32x256xf32>,
    return
  }
  func.func @transform_0(%arg0: i32) -> (i32, i32, i32) {
    %c0_i32 = arith.constant 0 : i32
    %c0_i32_0 = arith.constant 0 : i32
    %c0_i32_1 = arith.constant 0 : i32
    return %arg0, %c0_i32, %c0_i32_0 : i32, i32, i32
  }
  func.func @transform_1(%arg0: i32) -> (i32, i32) {
    %c0_i32 = arith.constant 0 : i32
    %c0_i32_0 = arith.constant 0 : i32
    %c0_i32_1 = arith.constant 0 : i32
    return %c0_i32, %c0_i32_0 : i32, i32
  }
  func.func @transform_2(%arg0: i32) -> (i32, i32) {
    %c0_i32 = arith.constant 0 : i32
    %c0_i32_0 = arith.constant 0 : i32
    %c0_i32_1 = arith.constant 0 : i32
    return %c0_i32, %c0_i32_0 : i32, i32
  }
  func.func @transform_3(%arg0: i32) -> (i32, i32) {
    %c0_i32 = arith.constant 0 : i32
    %c0_i32_0 = arith.constant 0 : i32
    %c0_i32_1 = arith.constant 0 : i32
    return %c0_i32, %c0_i32_0 : i32, i32
  }
  func.func @transform_4(%arg0: i32) -> (i32, i32) {
    %c0_i32 = arith.constant 0 : i32
    %c0_i32_0 = arith.constant 0 : i32
    %c0_i32_1 = arith.constant 0 : i32
    return %c0_i32, %c0_i32_0 : i32, i32
  }
  func.func @transform_5(%arg0: i32) -> (i32, i32, i32) {
    %c0_i32 = arith.constant 0 : i32
    %c0_i32_0 = arith.constant 0 : i32
    %c0_i32_1 = arith.constant 0 : i32
    return %arg0, %c0_i32, %c0_i32_0 : i32, i32, i32
  }
}

</mosaic_0001>

<bundles_post_ra>
// kernel: tpu_custom_call.1
= control target key start
LH: loop header
LB: loop body
LE: loop exit
PB: predicated region body
PF: predicated region fallthrough
CT: control target
= control target key end

     0   :  { %10 = vsyncpa [#allocation3], 0  ;;  %s1166_s0 = inlined_call_operand.hbm [shape: f32[2,32,256], index: 0, kind: input, shape index: {}]   ;;  %s1167_s1 = inlined_call_operand.vmem [shape: f32[8,32], index: 1, kind: input, shape index: {}]   ;;  %s1168_s2 = inlined_call_operand.vmem [shape: f32[8,1], index: 2, kind: input, shape index: {}]   ;;  %s1169_s3 = inlined_call_operand.vmem [shape: f32[32,8], index: 3, kind: input, shape index: {}]   ;;  %s1170_s4 = inlined_call_operand.vmem [shape: f32[32,1], index: 4, kind: input, shape index: {}]   ;;  %s1171_s5 = inlined_call_operand.hbm [shape: f32[2,32,256], index: 5, kind: output, shape index: {}]  }
   0x1   :  { %12 = vsyncpa [#allocation3 + $0x1], 0 }
   0x2   :  { %13 = vsyncpa [#allocation4], 0 }
   0x3   :  { %15 = vsyncpa [#allocation4 + $0x1], 0  ;;  %s930_s18 = smov 0   ;;  %s932_s19 = smov 0  }
   0x4   :  { %s934_s20 = smov 0   ;;  %s936_s21 = smov 0  }
   0x5 LB: > { %s951_s22 = sadd.s32 4294967295, %s888_s21   ;;  %s665_s23 = sadd.s32 4294967294, %s888_s21   ;;  %s888_s21 = sphi %s936_s21, %s1186_s21   ;;  %s884_s20 = sphi %s934_s20, %s1185_s20   ;;  %s880_s19 = sphi %s932_s19, %s1184_s19   ;;  %s876_s18 = sphi %s930_s18, %s1183_s18  }
   0x6   : > { %s955_s24 = sadd.s32 1, %s888_s21   ;;  %s28_s25 = sadd.s32 1, %s884_s20 }
   0x7   : > { %s25_s26 = ssub.s32 %s888_s21, %s955_s24  ;;  %p35_p0 = scmp.ne.s32.totalorder %s884_s20, %s880_s19 }
   0x8   : > { %p26_p1 = scmp.eq.s32.totalorder %s25_s26, 0  ;;  %p36_p2 = scmp.eq.s32.totalorder %s888_s21, 0 }
   0x9   : > { %p41_p3 = scmp.ne.s32.totalorder %s880_s19, %s876_s18  ;;  %p42_p4 = scmp.eq.s32.totalorder %s951_s22, 0 }
   0xa   : > { %s967_s27 = scalar_select %p26_p1, %s884_s20, %s28_s25  }
   0xb   : > { %p969_p5 = por %p36_p2, %p35_p0  ;;  %p973_p6 = por %p42_p4, %p41_p3 }
   0xc   : > { %p149_p7 = scmp.eq.s32.totalorder %s951_s22, 1  ;;  %p155_p8 = scmp.eq.s32.totalorder %s665_s23, 1 }
   0xd   : > { %s1175_s29 = scalar_select %p973_p6, 1, 0 }
   0xe   : > { %p732_p10 = scmp.lt.s32.totalorder %s888_s21, 2  ;;  %p980_p11 = por %p149_p7, %p35_p0 }
   0xf   : > { %p984_p12 = por %p155_p8, %p41_p3  ;;  %s187_s7 = sand.u32 1, %s884_s20  }
  0x10   : > { %s1176_s30 = scalar_select %p980_p11, 1, 0 }
  0x11   : > { %s1177_s6 = scalar_select %p984_p12, 1, 0 }
  0x12   : > { %s689_s8 = sshll.u32 %s888_s21, 10  ;;  %s668_s9 = sshll.u32 %s187_s7, 6 }
  0x13   : > { %s993_s12 = scalar_lea.hbm %s1166_s0, %s689_s8  ;;  %s191_s13 = scalar_lea.vmem [#allocation2], %s668_s9 }
  0x14   : > { %s198_s14 = sshll.u32 %s191_s13, 4  ;;  %p997_p13 = pnand %p732_p10, %p969_p5  ;;  %s1001_s14 = int_to_ptr.vmem [resolvable:$true] %s198_s14 }
  0x15   : > { %s1003_s16 = scalar_lea.sflag [#allocation3], %s187_s7  ;;  %s796_s17 = scalar_lea.hbm %s993_s12, 1024 }
  0x16   : > { %p797_p0 = scmp.ne.s32.totalorder %s993_s12, %s796_s17  ;;  %p798_p1 = pneg %p997_p13 }
  0x17   : > { %s801_s26 = scalar_lea.hbm %s1166_s0, 2048  ;;  %p802_p4 = scmp.lt.s32.totalorder %s993_s12, %s1166_s0 }
  0x18   : > { %p799_p2 = pnand %p798_p1, %p797_p0  ;;  %p803_p5 = scmp.lt.s32.totalorder %s801_s26, %s796_s17 }
  0x1a   : > { %p800_p3 = pneg %p799_p2  ;;  %p804_p7 = por %p803_p5, %p802_p4 }
  0x1c   : > { %p805_p8 = pnand %p804_p7, %p800_p3 }
  0x1e   : > { %808 = shalt.err (!%p805_p8)
}
  0x1f   : > { %s809_s7 = scalar_lea.vmem %s1001_s14, 1024  ;;  %s890_s9 = smov [#allocation2]  }
  0x20   : > { %p810_p10 = scmp.ne.s32.totalorder %s1001_s14, %s809_s7  ;;  %s814_s10 = sshll.u32 %s890_s9, 4  ;;  %s815_s10 = int_to_ptr.vmem [resolvable:$false] %s814_s10 }
  0x21   : > { %s816_s11 = scalar_lea.vmem %s815_s10, 2048  ;;  %p817_p2 = scmp.lt.s32.totalorder %s1001_s14, %s815_s10 }
  0x22   : > { %p812_p9 = pnand %p810_p10, %p798_p1  ;;  %p818_p12 = scmp.lt.s32.totalorder %s816_s11, %s809_s7 }
  0x24   : > { %p813_p0 = pneg %p812_p9  ;;  %p819_p11 = por %p818_p12, %p817_p2 }
  0x26   : > { %p820_p6 = pnand %p819_p11, %p813_p0 }
  0x28   : > { %823 = shalt.err (!%p820_p6)
}
  0x29   : > { %s891_s13 = smov 256   ;;  %s892_s17 = smov 16  }
  0x2a   : > { %727 = dma.hbm_to_vmem [thread:$0]  (!%p997_p13), %s993_s12, 1024, %s1001_s14, %s1003_s16, %s891_s13, %s891_s13, %s892_s17  }
  0x2b   : > { %p671_p9 = scmp.ge.s32.totalorder %s888_s21, 1  ;;  %p206_p1 = scmp.lt.s32.totalorder %s888_s21, 3 }
  0x2d   : > { %p207_p3 = pnand %p671_p9, %p206_p1 }
  0x2e   : > { %s1027_s23 = sand.u32 (!%p207_p3), 1, %s880_s19   ;;  %p1179_p6 = scmp.ne.s32.totalorder (!%p207_p3), %s1175_s29, 0 }
  0x2f   : > { %210 = sbr.rel (%p207_p3) target bundleno = 937 (0x3a9), region = 40  ;;  %s672_s25 = sshll.u32 (!%p207_p3), %s1027_s23, 6 }
  0x30   : > { %s213_s26 = scalar_lea.sflag (!%p207_p3), [#allocation3], %s1027_s23  ;;  %s216_s28 = scalar_lea.vmem (!%p207_p3), [#allocation2], %s672_s25 }
  0x34   : > { %867 = dma.done.wait (%p1179_p6), %s213_s26, 1024  }
  0x35   : > { %869 = vsyncadd (%p1179_p6), %s213_s26, 4294966272  ;;  %v1037_v0 = vld [vmem:[%s216_s28 + $0x30] sm:$0xff]  ;;  %v1039_v1 = vld [vmem:[%s216_s28 + $0x38] sm:$0xff]  ;;  %v893_v16 = vmov 0.0   ;;  %vm894_vm0 = vmmov 0   ;;  %v895_v17 = vmov 0  }
  0x36   : > { %v1041_v2 = vld [vmem:[%s216_s28 + $0x20] sm:$0xff]  ;;  %v276_v3 = vmax.f32 %v1037_v0, %v1039_v1  ;;  %v260_v4 = vadd.f32 %v1039_v1, %v1037_v0  ;;  %v1047_v5 = vld [vmem:[%s216_s28 + $0x28] sm:$0xff]  ;;  %v1049_v6 = vld [vmem:[%s216_s28 + $0x10] sm:$0xff]  ;;  %701 = vmatprep.subr.mxu0 %v893_v16  ;;  %709 = vmatprep.mubr.msk.f32.mxu0 %vm894_vm0, %v893_v16  ;;  %vm279_vm1 = vcmask 7168   ;;  %vm291_vm2 = vcmask 261120   ;;  %s896_s7 = smov 127  }
  0x37   : > { %v1051_v7 = vld [vmem:[%s216_s28 + $0x18] sm:$0xff]  ;;  %v257_v8 = vadd.f32 %v1047_v5, %v1041_v2  ;;  %v1057_v10 = vld [vmem:[%s216_s28] sm:$0xff]  ;;  %v1059_v11 = vld [vmem:[%s216_s28 + $0x8] sm:$0xff]  ;;  %v273_v12 = vmax.f32 %v1041_v2, %v1047_v5  ;;  %774 = vset.pattern.permute.xlu0 %v895_v17  ;;  %775 = vset.pattern.permute.xlu1 %v895_v17  ;;  %vm400_vm3 = vcmask 64512   ;;  %s242_s9 = scalar_lea.vmem [#allocation5], %s672_s25  ;;  %s690_s11 = sshll.u32 %s951_s22, 10 }
  0x38   : > { %277 = vmax.xlane.f32.xlu1 %v276_v3  ;;  %261 = vadd.xlane.f32.xlu0 %v260_v4  ;;  %v254_v9 = vadd.f32 %v1051_v7, %v1049_v6  ;;  %v251_v13 = vadd.f32 %v1059_v11, %v1057_v10  ;;  %v270_v14 = vmax.f32 %v1049_v6, %v1051_v7  ;;  %v285_v18 = vld [vmem:[%s1168_s2] sm:$0xff]  ;;  %v377_v38 = vld [vmem:[%s1170_s4 + $0x8] sm:$0xff]  ;;  %v378_v39 = vld [vmem:[%s1170_s4 + $0x10] sm:$0xff]  ;;  %s592_s10 = sshll.u32 %s242_s9, 4  ;;  %s1121_s17 = scalar_lea.hbm %s1171_s5, %s690_s11  ;;  %s1116_s10 = int_to_ptr.vmem [resolvable:$true] %s592_s10 }
  0x39   : > { %v267_v15 = vmax.f32 %v1057_v10, %v1059_v11  ;;  %v284_v34 = vld [vmem:[%s1167_s1] sm:$0xff]  ;;  %v379_v40 = vld [vmem:[%s1170_s4 + $0x18] sm:$0xff]  ;;  %v373_v50 = vld [vmem:[%s1169_s3 + $0x8] sm:$0xff]  ;;  %s579_s22 = scalar_lea.sflag [#allocation4], %s1027_s23  ;;  %s824_s26 = scalar_lea.vmem %s1116_s10, 1024 }
  0x3a   : > { %v372_v36 = vld [vmem:[%s1169_s3] sm:$0xff]  ;;  %v374_v51 = vld [vmem:[%s1169_s3 + $0x10] sm:$0xff]  ;;  %v375_v52 = vld [vmem:[%s1169_s3 + $0x18] sm:$0xff]  ;;  %p825_p11 = scmp.ne.s32.totalorder %s1116_s10, %s824_s26  ;;  %p1180_p12 = scmp.ne.s32.totalorder %s1176_s30, 0 }
  0x3b   : > { %714 = vmatprep.mubr.msk.f32.mxu1 %vm400_vm3, %v372_v36  ;;  %v376_v37 = vld [vmem:[%s1170_s4] sm:$0xff]  ;;  %s897_s28 = smov [#allocation5]  }
  0x3c   : > { %258 = vadd.xlane.f32.xlu0 %v257_v8  ;;  %255 = vadd.xlane.f32.xlu1 %v254_v9  ;;  %p826_p13 = pnand %p825_p11, %p1180_p12  ;;  %s828_s29 = sshll.u32 %s897_s28, 4  ;;  %s829_s29 = int_to_ptr.vmem [resolvable:$false] %s828_s29 }
  0x3d   : > { %s830_s12 = scalar_lea.vmem %s829_s29, 2048  ;;  %p831_p5 = scmp.lt.s32.totalorder %s1116_s10, %s829_s29 }
  0x3e   : > { %p827_p4 = pneg %p826_p13  ;;  %p832_p7 = scmp.lt.s32.totalorder %s830_s12, %s824_s26 }
  0x40   : > { %274 = vmax.xlane.f32.xlu0 %v273_v12  ;;  %252 = vadd.xlane.f32.xlu1 %v251_v13  ;;  %p833_p8 = por %p832_p7, %p831_p5 }
  0x42   : > { %p834_p10 = pnand %p833_p8, %p827_p4 }
  0x44   : > { %271 = vmax.xlane.f32.xlu0 %v270_v14  ;;  %268 = vmax.xlane.f32.xlu1 %v267_v15 }
  0x55   : > { %382 = vperm.xlu1 %775, %v376_v37  }
  0x59   : > { %387 = vperm.xlu1 %775, %v377_v38  }
  0x5a   : > { %288 = vperm.xlu0 %774, %v285_v18  }
  0x5d   : > { %392 = vperm.xlu1 %775, %v378_v39  }
  0x61   : > { %397 = vperm.xlu1 %775, %v379_v40  }
  0xc1   : > { %v278_v19 = vpop.xlane.xlu1 %277  ;;  %v262_v20 = vpop.xlane.xlu0 %261 }
  0xc2   : > { %v266_v21 = vmul.f32 0.00390625, %v262_v20 }
  0xc4   : > { %v283_v22 = vsel %vm279_vm1, %v266_v21, %v278_v19 }
  0xc5   : > { %702 = vmatpush3.msra.mxu0 %v283_v22  ;;  %v259_v23 = vpop.xlane.xlu0 %258  ;;  %v256_v24 = vpop.xlane.xlu1 %255 }
  0xc6   : > { %703 = vmatprep.subr.mxu0 %v893_v16  ;;  %v265_v25 = vmul.f32 0.00390625, %v259_v23  ;;  %v264_v29 = vmul.f32 0.00390625, %v256_v24 }
  0xc9   : > { %v275_v26 = vpop.xlane.xlu0 %274  ;;  %v253_v27 = vpop.xlane.xlu1 %252 }
  0xca   : > { %v282_v28 = vsel %vm279_vm1, %v265_v25, %v275_v26  ;;  %v263_v30 = vmul.f32 0.00390625, %v253_v27 }
  0xcb   : > { %704 = vmatpush3.msra.mxu0 %v282_v28 }
  0xcc   : > { %705 = vmatprep.subr.mxu0 %v893_v16 }
  0xcd   : > { %v272_v31 = vpop.xlane.xlu0 %271  ;;  %v269_v32 = vpop.xlane.xlu1 %268 }
  0xce   : > { %v281_v33 = vsel %vm279_vm1, %v264_v29, %v272_v31  ;;  %v280_v35 = vsel %vm279_vm1, %v263_v30, %v269_v32 }
  0xcf   : > { %706 = vmatpush3.msra.mxu0 %v281_v33 }
  0xd0   : > { %707 = vmatprep.subr.mxu0 %v893_v16 }
  0xd1   : > { %708 = vmatpush3.msra.mxu0 %v280_v35  ;;  %v383_v53 = vpop.permute.xlu1 %382 }
  0xd2   : > { %710 = vmatmul.mubr.msk.f32.vlgmr.msra.gmra.mxu0 %vm291_vm2, %v284_v34 }
  0xd5   : > { %v289_v41 = vpop.permute.xlu0 %288  ;;  %v388_v54 = vpop.permute.xlu1 %387 }
  0xd9   : > { %v393_v60 = vpop.permute.xlu1 %392 }
  0xdd   : > { %v398_v63 = vpop.permute.xlu1 %397 }
 0x192   : > { %v361_v42 = vpop.f32.mrf.mxu0 }
 0x193   : > { %v362_v43 = vadd.f32 %v361_v42, %v289_v41 }
 0x194   : > { %v711_v44 = vpop.f32.mrf.mxu0 }
 0x195   : > { %v675_v45 = vmul.f32 -1.442695, %v362_v43 }
 0x197   : > { %776 = vpow2.f32 %v675_v45 }
 0x1a4   : > { %v777_v46 = vpop.eup %776 }
 0x1a5   : > { %v368_v47 = vadd.f32 1.0, %v777_v46 }
 0x1a7   : > { %778 = vrcp.f32 %v368_v47 }
 0x1b4   : > { %v779_v48 = vpop.eup %778 }
 0x1b5   : > { %v371_v49 = vmul.f32 %v779_v48, %v362_v43 }
 0x1b7   : > { %712 = vmatprep.subr.mxu1 %v371_v49 }
 0x1b8   : > { %713 = vmatpush3.msra.mxu1 %v371_v49 }
 0x1b9   : > { %715 = vmatmul.mubr.msk.f32.vlgmr.msra.gmra.mxu1 %vm400_vm3, %v373_v50 }
 0x1ba   : > { %717 = vmatprep.mubr.msk.f32.mxu1 %vm400_vm3, %v374_v51 }
 0x1bd   : > { %718 = vmatmul.mubr.msk.f32.gmra.mxu1 %vm400_vm3, %v375_v52 }
 0x279   : > { %v716_v55 = vpop.f32.mrf.mxu1 }
 0x27a   : > { %v485_v56 = vadd.f32 %v716_v55, %v388_v54 }
 0x27b   : > { %v479_v57 = vpop.f32.mrf.mxu1 }
 0x27c   : > { %504 = vrot.lane.b32.xlu1 %v485_v56, %s896_s7  ;;  %v480_v59 = vadd.f32 %v479_v57, %v383_v53 }
 0x27d   : > { %v719_v58 = vpop.f32.mrf.mxu1 }
 0x27e   : > { %v495_v3 = vadd.f32 %v719_v58, %v398_v63 }
 0x27f   : > { %v489_v61 = vpop.f32.mrf.mxu1 }
 0x280   : > { %502 = vrot.lane.b32.xlu1 %v480_v59, %s896_s7  ;;  %v490_v62 = vadd.f32 %v489_v61, %v393_v60 }
 0x284   : > { %506 = vrot.lane.b32.xlu1 %v490_v62, %s896_s7 }
 0x288   : > { %508 = vrot.lane.b32.xlu1 %v495_v3, %s896_s7 }
 0x2ee   : > { %v505_v4 = vpop.permute.xlu1 %504 }
 0x2ef   : > { %v515_v8 = vadd.f32 %v505_v4, %v485_v56 }
 0x2f1   : > { %v681_v9 = vmul.f32 -1.442695, %v515_v8 }
 0x2f2   : > { %v503_v12 = vpop.permute.xlu1 %502 }
 0x2f3   : > { %780 = vpow2.f32 %v681_v9  ;;  %v514_v13 = vadd.f32 %v503_v12, %v480_v59 }
 0x2f5   : > { %v680_v14 = vmul.f32 -1.442695, %v514_v13 }
 0x2f6   : > { %v507_v15 = vpop.permute.xlu1 %506 }
 0x2f7   : > { %782 = vpow2.f32 %v680_v14  ;;  %v516_v16 = vadd.f32 %v507_v15, %v490_v62 }
 0x2f9   : > { %v682_v17 = vmul.f32 -1.442695, %v516_v16 }
 0x2fa   : > { %v509_v18 = vpop.permute.xlu1 %508 }
 0x2fb   : > { %784 = vpow2.f32 %v682_v17  ;;  %v517_v19 = vadd.f32 %v509_v18, %v495_v3 }
 0x2fd   : > { %v683_v20 = vmul.f32 -1.442695, %v517_v19 }
 0x2ff   : > { %786 = vpow2.f32 %v683_v20 }
 0x300   : > { %v781_v21 = vpop.eup %780 }
 0x301   : > { %v531_v22 = vadd.f32 1.0, %v781_v21 }
 0x303   : > { %788 = vrcp.f32 %v531_v22 }
 0x304   : > { %v783_v23 = vpop.eup %782 }
 0x305   : > { %v530_v24 = vadd.f32 1.0, %v783_v23 }
 0x307   : > { %790 = vrcp.f32 %v530_v24 }
 0x308   : > { %v785_v25 = vpop.eup %784 }
 0x309   : > { %v532_v26 = vadd.f32 1.0, %v785_v25 }
 0x30b   : > { %792 = vrcp.f32 %v532_v26 }
 0x30c   : > { %v787_v27 = vpop.eup %786 }
 0x30d   : > { %v533_v28 = vadd.f32 1.0, %v787_v27 }
 0x30f   : > { %794 = vrcp.f32 %v533_v28 }
 0x310   : > { %v789_v29 = vpop.eup %788 }
 0x311   : > { %549 = vperm.xlu1 %775, %v789_v29  }
 0x314   : > { %v791_v30 = vpop.eup %790 }
 0x315   : > { %544 = vperm.xlu0 %774, %v791_v30  }
 0x318   : > { %v793_v31 = vpop.eup %792 }
 0x319   : > { %554 = vperm.xlu0 %774, %v793_v31  }
 0x31c   : > { %v795_v32 = vpop.eup %794 }
 0x31d   : > { %559 = vperm.xlu1 %775, %v795_v32  }
 0x38c   : > { %v550_v33 = vpop.permute.xlu1 %549 }
 0x38d   : > { %v564_v34 = vmul.f32 %v550_v33, %v1049_v6  ;;  %v565_v35 = vmul.f32 %v550_v33, %v1051_v7 }
 0x38f   : > { %572 = vst [vmem:[%s242_s9 + $0x10] sm:$0xff] %v564_v34  ;;  %573 = vst [vmem:[%s242_s9 + $0x18] sm:$0xff] %v565_v35 }
 0x390   : > { %v545_v36 = vpop.permute.xlu0 %544 }
 0x391   : > { %v562_v37 = vmul.f32 %v545_v36, %v1057_v10  ;;  %v563_v38 = vmul.f32 %v545_v36, %v1059_v11 }
 0x393   : > { %570 = vst [vmem:[%s242_s9] sm:$0xff] %v562_v37  ;;  %571 = vst [vmem:[%s242_s9 + $0x8] sm:$0xff] %v563_v38 }
 0x394   : > { %v555_v39 = vpop.permute.xlu0 %554 }
 0x395   : > { %v566_v40 = vmul.f32 %v555_v39, %v1041_v2  ;;  %v567_v6 = vmul.f32 %v555_v39, %v1047_v5 }
 0x397   : > { %574 = vst [vmem:[%s242_s9 + $0x20] sm:$0xff] %v566_v40  ;;  %575 = vst [vmem:[%s242_s9 + $0x28] sm:$0xff] %v567_v6 }
 0x398   : > { %v560_v7 = vpop.permute.xlu1 %559 }
 0x399   : > { %v568_v10 = vmul.f32 %v560_v7, %v1037_v0  ;;  %v569_v2 = vmul.f32 %v560_v7, %v1039_v1 }
 0x39b   : > { %576 = vst [vmem:[%s242_s9 + $0x30] sm:$0xff] %v568_v10  ;;  %577 = vst [vmem:[%s242_s9 + $0x38] sm:$0xff] %v569_v2 }
 0x39c   : > { %837 = shalt.err (!%p834_p10)
}
 0x39d   : > { %s838_s14 = scalar_lea.hbm %s1121_s17, 1024  ;;  %s842_s8 = scalar_lea.hbm %s1171_s5, 2048 }
 0x39e   : > { %p839_p0 = scmp.ne.s32.totalorder %s1121_s17, %s838_s14  ;;  %p843_p1 = scmp.lt.s32.totalorder %s1121_s17, %s1171_s5 }
 0x39f   : > { %p844_p3 = scmp.lt.s32.totalorder %s842_s8, %s838_s14 }
 0x3a0   : > { %p840_p2 = pnand %p839_p0, %p1180_p12 }
 0x3a1   : > { %p845_p6 = por %p844_p3, %p843_p1 }
 0x3a2   : > { %p841_p9 = pneg %p840_p2 }
 0x3a4   : > { %p846_p11 = pnand %p845_p6, %p841_p9 }
 0x3a6   : > { %849 = shalt.err (!%p846_p11)
}
 0x3a7   : > { %s898_s11 = smov 256   ;;  %s899_s25 = smov 16  }
 0x3a8   : > { %722 = dma.vmem_to_hbm [thread:$0]  (%p1180_p12), %s1116_s10, 1024, %s1121_s17, %s579_s22, %s898_s11, %s898_s11, %s899_s25  }
 0x3a9 PF: > { %s607_s13 = sand.u32 1, %s876_s18   ;;  %p1181_p13 = scmp.ne.s32.totalorder %s1177_s6, 0 }
 0x3aa   : > { %p1182_p4 = scmp.ge.s32.totalorder %s888_s21, 2  ;;  %s608_s26 = scalar_lea.sflag [#allocation4], %s607_s13 }
 0x3ac   : > { %p729_p5 = pnand %p1182_p4, %p1181_p13 }
 0x3ae   : > { %p730_p7 = pneg %p729_p5 }
 0x3b0   : > { %871 = dma.done.wait (%p730_p7), %s608_s26, 1024  }
 0x3b1   : > { %873 = vsyncadd (%p730_p7), %s608_s26, 4294966272  ;;  %p18_p8 = scmp.ge.s32.totalorder %s955_s24, 4   ;;  %s1183_s18 = smov %s880_s19 }
 0x3b2   : > { %s1184_s19 = smov %s884_s20  ;;  %s1185_s20 = smov %s967_s27 }
 0x3b3   : > { %s1186_s21 = smov %s955_s24  ;;  %20 = sbr.rel (!%p18_p8) target bundleno = 5 (0x5), region = 85 }
 0x3b8   :  { %613 = vsyncpa [#allocation3], 1 }
 0x3b9   :  { %615 = vsyncpa [#allocation3 + $0x1], 1 }
 0x3ba   :  { %616 = vsyncpa [#allocation4], 1 }
 0x3bb   :  { %618 = vsyncpa [#allocation4 + $0x1], 1 }

</bundles_post_ra>
